<compile_context>
chip_gen: v7x
topology: tpu7x:2x2x1
jax: 0.10.0
libtpu: 0.0.40
codegen_flags: <defaults>
</compile_context>

<pallas_src>
import math

import jax
import jax.numpy as jnp
import numpy as np
from jax import lax
from jax.experimental import pallas as pl
from jax.experimental.pallas import tpu as pltpu

# ---- small, self-consistent config (scaled-down GPT-2 block) ----
BATCH = 2
SEQ = 8
D_MODEL = 32
N_HEADS = 4
D_HEAD = D_MODEL // N_HEADS
D_HIDDEN = 64
LN_EPS = 1e-5            # torch.nn.LayerNorm default
NEG_INF = -1e10          # matches torch masked_fill(mask == 0, -1e10)

N_ROWS = BATCH * SEQ     # batch folded into rows
D3 = 3 * D_MODEL         # fused qkv width
BLOB_W = D3 + D_MODEL + 2 * D_HIDDEN   # 96 + 32 + 64 + 64 = 256 (lane-dense)

assert SEQ & (SEQ - 1) == 0, "in-kernel mask generation assumes power-of-2 SEQ"
SEQ_SHIFT = SEQ.bit_length() - 1


def _layernorm(x, gamma, beta):
    mu = jnp.mean(x, axis=-1, keepdims=True)
    var = jnp.mean((x - mu) ** 2, axis=-1, keepdims=True)
    return (x - mu) * lax.rsqrt(var + LN_EPS) * gamma + beta


def _gelu_tanh(x):
    # nn.GELU(approximate='tanh')
    c = math.sqrt(2.0 / math.pi)
    return 0.5 * x * (1.0 + jnp.tanh(c * (x + 0.044715 * x * x * x)))


def _softmax_rows(scores):
    """Row softmax; divide goes to the EUP (approx reciprocal + 1 Newton step)."""
    m = jnp.max(scores, axis=-1, keepdims=True)
    e = jnp.exp(scores - m)
    s = jnp.sum(e, axis=-1, keepdims=True)
    inv = pl.reciprocal(s, approx=True)
    inv = inv * (2.0 - s * inv)          # Newton refinement -> ~f32 accuracy
    return e * inv


def decoder_layer_kernel(x_ref, blob_ref, o_ref):
    # x: (B*S, D) with batch folded into rows.
    x = x_ref[...]

    # ---- unpack the single parameter blob (all static, aligned slices) ----
    w = blob_ref[0:D_MODEL, :]                                   # (D, 256)
    wqkv = w[:, 0:D3]                                            # (D, 3D)
    wo = w[:, D3:D3 + D_MODEL]                                   # (D, D)
    w1 = w[:, D3 + D_MODEL:D3 + D_MODEL + D_HIDDEN]              # (D, DH)
    w2t = w[:, D3 + D_MODEL + D_HIDDEN:BLOB_W]                   # (D, DH) = w2^T

    pr = blob_ref[pl.ds(D_MODEL, 8), :]                          # (8, 256)
    bqkv = pr[0:1, 0:D3]
    bo = pr[1:2, 0:D_MODEL]
    b1 = pr[2:3, 0:D_HIDDEN]
    b2 = pr[3:4, 0:D_MODEL]
    g1 = pr[4:5, 0:D_MODEL]
    be1 = pr[5:6, 0:D_MODEL]
    g2 = pr[6:7, 0:D_MODEL]
    be2 = pr[7:8, 0:D_MODEL]

    # ---- causal + batch-separation additive bias, generated in-kernel ----
    row = lax.broadcasted_iota(jnp.int32, (N_ROWS, N_ROWS), 0)
    col = lax.broadcasted_iota(jnp.int32, (N_ROWS, N_ROWS), 1)
    same_batch = jnp.right_shift(row, SEQ_SHIFT) == jnp.right_shift(col, SEQ_SHIFT)
    allowed = same_batch & (col <= row)
    attn_bias = jnp.where(allowed, jnp.float32(0.0), jnp.float32(NEG_INF))

    # ---- ln_1 + fused qkv projection (one MXU matmul instead of three) ----
    h = _layernorm(x, g1, be1)
    qkv = jnp.dot(h, wqkv, preferred_element_type=jnp.float32) + bqkv   # (N, 3D)
    q = qkv[:, 0:D_MODEL]
    k = qkv[:, D_MODEL:2 * D_MODEL]
    v = qkv[:, 2 * D_MODEL:3 * D_MODEL]

    scale = 1.0 / math.sqrt(D_HEAD)

    # Per-head attention (static loop, H=4).  Head outputs are placed into
    # their lane slots and the output projection is done ONCE with full wo
    # after the loop (one K=32 matmul instead of four K=8 matmuls).
    head_outs = []
    for hh in range(N_HEADS):
        lo, hi = hh * D_HEAD, (hh + 1) * D_HEAD
        qh, kh, vh = q[:, lo:hi], k[:, lo:hi], v[:, lo:hi]        # (N, dk)
        # q @ k^T without materializing a transpose
        scores = lax.dot_general(qh, kh, (((1,), (1,)), ((), ())),
                                 preferred_element_type=jnp.float32)
        p = _softmax_rows(scores * scale + attn_bias)             # (N, N)
        head_outs.append(jnp.dot(p, vh, preferred_element_type=jnp.float32))
    attn_cat = jnp.concatenate(head_outs, axis=1)                 # (N, D)
    attn = jnp.dot(attn_cat, wo, preferred_element_type=jnp.float32) + bo

    # ---- residual 1 (dropout = identity) ----
    x1 = x + attn

    # ---- ln_2 + feed-forward ----
    h2 = _layernorm(x1, g2, be2)
    f = jnp.dot(h2, w1, preferred_element_type=jnp.float32) + b1
    f = _gelu_tanh(f)
    # second FFN matmul against packed w2^T: contract last dims -> no transpose
    f = lax.dot_general(f, w2t, (((1,), (1,)), ((), ())),
                        preferred_element_type=jnp.float32) + b2

    # ---- residual 2 (dropout = identity) ----
    o_ref[...] = x1 + f


# -------- wrapper: pack ALL params into one (40, 256) blob, fold batch --------
def _pack_blob(params):
    wqkv = jnp.concatenate([params["wq"], params["wk"], params["wv"]], axis=1)
    w_rows = jnp.concatenate(
        [wqkv, params["wo"], params["w1"], params["w2"].T], axis=1)   # (32, 256)

    def row(v):
        v = jnp.asarray(v, jnp.float32).reshape(-1)
        return jnp.pad(v, (0, BLOB_W - v.shape[0]))

    bqkv = jnp.concatenate([params["bq"].reshape(-1), params["bk"].reshape(-1),
                            params["bv"].reshape(-1)])
    p_rows = jnp.stack([row(bqkv), row(params["bo"]), row(params["b1"]),
                        row(params["b2"]), row(params["g1"]), row(params["be1"]),
                        row(params["g2"]), row(params["be2"])])          # (8, 256)
    return jnp.concatenate([w_rows.astype(jnp.float32), p_rows], axis=0)  # (40, 256)


def decoder_layer(x, mask, params):
    B, S, D = x.shape
    assert (B, S, D) == (BATCH, SEQ, D_MODEL)
    # The kernel regenerates the causal (+ block-diagonal batch) mask from
    # iotas; verify the caller-supplied mask matches that assumption.
    causal = np.tril(np.ones((SEQ, SEQ)))
    assert np.array_equal(np.asarray(mask[0]) != 0, causal != 0), \
        "kernel assumes a causal attention mask"
    # TODO(synk): arbitrary (non-causal) masks would need to be passed into the
    # kernel (e.g. as an extra small input) instead of the in-kernel iota mask.

    x2d = x.reshape(B * S, D).astype(jnp.float32)
    blob = _pack_blob(params)

    vmem = pl.BlockSpec(memory_space=pltpu.MemorySpace.VMEM)
    out = pl.pallas_call(
        decoder_layer_kernel,
        out_shape=jax.ShapeDtypeStruct((B * S, D), jnp.float32),
        in_specs=[vmem, vmem],
        out_specs=vmem,
    )(x2d, blob)
    return out.reshape(B, S, D)


# -------- pure-JAX reference for validation --------
def reference(x, mask, p):
    def ln(t, g, b):
        mu = jnp.mean(t, axis=-1, keepdims=True)
        var = jnp.mean((t - mu) ** 2, axis=-1, keepdims=True)
        return (t - mu) * lax.rsqrt(var + LN_EPS) * g + b

    B, S, D = x.shape
    h = ln(x, p["g1"][0], p["be1"][0])
    q = h @ p["wq"] + p["bq"][0]
    k = h @ p["wk"] + p["bk"][0]
    v = h @ p["wv"] + p["bv"][0]
    q = q.reshape(B, S, N_HEADS, D_HEAD).transpose(0, 2, 1, 3)
    k = k.reshape(B, S, N_HEADS, D_HEAD).transpose(0, 2, 1, 3)
    v = v.reshape(B, S, N_HEADS, D_HEAD).transpose(0, 2, 1, 3)
    scores = jnp.einsum("bhqd,bhkd->bhqk", q, k) / math.sqrt(D_HEAD)
    scores = jnp.where(mask[:, None] == 0, NEG_INF, scores)
    pa = jax.nn.softmax(scores, axis=-1)
    attn = jnp.einsum("bhqk,bhkd->bhqd", pa, v)
    attn = attn.transpose(0, 2, 1, 3).reshape(B, S, D)
    attn = attn @ p["wo"] + p["bo"][0]
    x1 = x + attn
    h2 = ln(x1, p["g2"][0], p["be2"][0])
    f = h2 @ p["w1"] + p["b1"][0]
    f = _gelu_tanh(f)
    f = f @ p["w2"] + p["b2"][0]
    return x1 + f


def make_params(key):
    ks = jax.random.split(key, 16)
    s = 0.05

    def rn(k, shape):
        return (s * jax.random.normal(k, shape)).astype(jnp.float32)

    return dict(
        wq=rn(ks[0], (D_MODEL, D_MODEL)), bq=rn(ks[1], (1, D_MODEL)),
        wk=rn(ks[2], (D_MODEL, D_MODEL)), bk=rn(ks[3], (1, D_MODEL)),
        wv=rn(ks[4], (D_MODEL, D_MODEL)), bv=rn(ks[5], (1, D_MODEL)),
        wo=rn(ks[6], (D_MODEL, D_MODEL)), bo=rn(ks[7], (1, D_MODEL)),
        g1=(1.0 + rn(ks[8], (1, D_MODEL))), be1=rn(ks[9], (1, D_MODEL)),
        g2=(1.0 + rn(ks[10], (1, D_MODEL))), be2=rn(ks[11], (1, D_MODEL)),
        w1=rn(ks[12], (D_MODEL, D_HIDDEN)), b1=rn(ks[13], (1, D_HIDDEN)),
        w2=rn(ks[14], (D_HIDDEN, D_MODEL)), b2=rn(ks[15], (1, D_MODEL)),
    )


if __name__ == "__main__":
    key = jax.random.PRNGKey(0)
    kx, kp = jax.random.split(key)
    x = jax.random.normal(kx, (BATCH, SEQ, D_MODEL), dtype=jnp.float32)
    # causal mask, shape (1, S, S); broadcast over batch and heads like torch
    mask = jnp.tril(jnp.ones((SEQ, SEQ), dtype=jnp.float32))[None, :, :]
    params = make_params(kp)

    out = jax.block_until_ready(decoder_layer(x, mask, params))
    ref = jax.block_until_ready(reference(x, mask, params))
    np.testing.assert_allclose(np.asarray(out), np.asarray(ref),
                               rtol=1e-4, atol=1e-4)
    print("KERNEL_OK")
</pallas_src>

<mosaic_0001>
module attributes {stable_mosaic.version = 11 : i64} {
  func.func @decoder_layer_kernel(%arg0: memref<16x32xf32, #tpu.memory_space<vmem>>, %arg1: memref<40x256xf32, #tpu.memory_space<vmem>>, %arg2: memref<16x32xf32, #tpu.memory_space<vmem>>) attributes {dimension_semantics = [], scalar_prefetch = 0 : i64, scratch_operands = 0 : i64, tpu.core_type = #tpu.core_type<tc>} {
    %c0 = arith.constant 0 : index
    %c0_0 = arith.constant 0 : index
    %0 = vector.load %arg0[%c0, %c0_0] : memref<16x32xf32, #tpu.memory_space<vmem>>, vector<16x32xf32>
    %c0_1 = arith.constant 0 : index
    %c0_2 = arith.constant 0 : index
    %1 = vector.load %arg1[%c0_1, %c0_2] : memref<40x256xf32, #tpu.memory_space<vmem>>, vector<32x256xf32>
    %2 = vector.extract_strided_slice %1 {offsets = [0, 0], sizes = [32, 96], strides = [1, 1]} : vector<32x256xf32> to vector<32x96xf32>
    %3 = vector.extract_strided_slice %1 {offsets = [0, 96], sizes = [32, 32], strides = [1, 1]} : vector<32x256xf32> to vector<32x32xf32>
    %4 = vector.extract_strided_slice %1 {offsets = [0, 128], sizes = [32, 64], strides = [1, 1]} : vector<32x256xf32> to vector<32x64xf32>
    %5 = vector.extract_strided_slice %1 {offsets = [0, 192], sizes = [32, 64], strides = [1, 1]} : vector<32x256xf32> to vector<32x64xf32>
    %c32 = arith.constant 32 : index
    %c0_3 = arith.constant 0 : index
    %6 = vector.load %arg1[%c32, %c0_3] : memref<40x256xf32, #tpu.memory_space<vmem>>, vector<8x256xf32>
    %7 = vector.extract_strided_slice %6 {offsets = [0, 0], sizes = [1, 96], strides = [1, 1]} : vector<8x256xf32> to vector<1x96xf32>
    %8 = vector.extract_strided_slice %6 {offsets = [1, 0], sizes = [1, 32], strides = [1, 1]} : vector<8x256xf32> to vector<1x32xf32>
    %9 = vector.extract_strided_slice %6 {offsets = [2, 0], sizes = [1, 64], strides = [1, 1]} : vector<8x256xf32> to vector<1x64xf32>
    %10 = vector.extract_strided_slice %6 {offsets = [3, 0], sizes = [1, 32], strides = [1, 1]} : vector<8x256xf32> to vector<1x32xf32>
    %11 = vector.extract_strided_slice %6 {offsets = [4, 0], sizes = [1, 32], strides = [1, 1]} : vector<8x256xf32> to vector<1x32xf32>
    %12 = vector.extract_strided_slice %6 {offsets = [5, 0], sizes = [1, 32], strides = [1, 1]} : vector<8x256xf32> to vector<1x32xf32>
    %13 = vector.extract_strided_slice %6 {offsets = [6, 0], sizes = [1, 32], strides = [1, 1]} : vector<8x256xf32> to vector<1x32xf32>
    %14 = vector.extract_strided_slice %6 {offsets = [7, 0], sizes = [1, 32], strides = [1, 1]} : vector<8x256xf32> to vector<1x32xf32>
    %15 = tpu.iota {dimensions = array<i32: 0>} : vector<16x16xi32>
    %16 = tpu.iota {dimensions = array<i32: 1>} : vector<16x16xi32>
    %c3_i32 = arith.constant 3 : i32
    %17 = vector.broadcast %c3_i32 : i32 to vector<16x16xi32>
    %18 = arith.shrsi %15, %17 : vector<16x16xi32>
    %c3_i32_4 = arith.constant 3 : i32
    %19 = vector.broadcast %c3_i32_4 : i32 to vector<16x16xi32>
    %20 = arith.shrsi %16, %19 : vector<16x16xi32>
    %21 = arith.cmpi eq, %18, %20 : vector<16x16xi32>
    %22 = arith.cmpi sle, %16, %15 : vector<16x16xi32>
    %23 = arith.andi %21, %22 : vector<16x16xi1>
    %cst = arith.constant 0.000000e+00 : f32
    %cst_5 = arith.constant -1.000000e+10 : f32
    %24 = vector.broadcast %cst : f32 to vector<16x16xf32>
    %25 = vector.broadcast %cst_5 : f32 to vector<16x16xf32>
    %26 = arith.select %23, %24, %25 : vector<16x16xi1>, vector<16x16xf32>
    %cst_6 = arith.constant dense<0.000000e+00> : vector<16xf32>
    %27 = vector.multi_reduction <add>, %0, %cst_6 [1] : vector<16x32xf32> to vector<16xf32>
    %28 = vector.shape_cast %27 : vector<16xf32> to vector<16x1xf32>
    %cst_7 = arith.constant 3.200000e+01 : f32
    %29 = vector.broadcast %cst_7 : f32 to vector<16x1xf32>
    %30 = arith.divf %28, %29 : vector<16x1xf32>
    %31 = vector.broadcast %30 : vector<16x1xf32> to vector<16x32xf32>
    %32 = arith.subf %0, %31 : vector<16x32xf32>
    %33 = arith.mulf %32, %32 : vector<16x32xf32>
    %cst_8 = arith.constant dense<0.000000e+00> : vector<16xf32>
    %34 = vector.multi_reduction <add>, %33, %cst_8 [1] : vector<16x32xf32> to vector<16xf32>
    %35 = vector.shape_cast %34 : vector<16xf32> to vector<16x1xf32>
    %cst_9 = arith.constant 3.200000e+01 : f32
    %36 = vector.broadcast %cst_9 : f32 to vector<16x1xf32>
    %37 = arith.divf %35, %36 : vector<16x1xf32>
    %38 = vector.broadcast %30 : vector<16x1xf32> to vector<16x32xf32>
    %39 = arith.subf %0, %38 : vector<16x32xf32>
    %cst_10 = arith.constant 9.99999974E-6 : f32
    %40 = vector.broadcast %cst_10 : f32 to vector<16x1xf32>
    %41 = arith.addf %37, %40 : vector<16x1xf32>
    %42 = math.rsqrt %41 : vector<16x1xf32>
    %43 = vector.broadcast %42 : vector<16x1xf32> to vector<16x32xf32>
    %44 = arith.mulf %39, %43 : vector<16x32xf32>
    %45 = vector.broadcast %11 : vector<1x32xf32> to vector<16x32xf32>
    %46 = arith.mulf %44, %45 : vector<16x32xf32>
    %47 = vector.broadcast %12 : vector<1x32xf32> to vector<16x32xf32>
    %48 = arith.addf %46, %47 : vector<16x32xf32>
    %cst_11 = arith.constant dense<0.000000e+00> : vector<16x96xf32>
    %49 = tpu.matmul %48, %2, %cst_11 {dimension_numbers = #tpu.dot_dimension_numbers<[1], [0], [0], [1], [0, 0, 1, 1], [], []>} : vector<16x32xf32>, vector<32x96xf32>, vector<16x96xf32> -> vector<16x96xf32>
    %50 = vector.broadcast %7 : vector<1x96xf32> to vector<16x96xf32>
    %51 = arith.addf %49, %50 : vector<16x96xf32>
    %52 = vector.extract_strided_slice %51 {offsets = [0, 0], sizes = [16, 32], strides = [1, 1]} : vector<16x96xf32> to vector<16x32xf32>
    %53 = vector.extract_strided_slice %51 {offsets = [0, 32], sizes = [16, 32], strides = [1, 1]} : vector<16x96xf32> to vector<16x32xf32>
    %54 = vector.extract_strided_slice %51 {offsets = [0, 64], sizes = [16, 32], strides = [1, 1]} : vector<16x96xf32> to vector<16x32xf32>
    %55 = vector.extract_strided_slice %52 {offsets = [0, 0], sizes = [16, 8], strides = [1, 1]} : vector<16x32xf32> to vector<16x8xf32>
    %56 = vector.extract_strided_slice %53 {offsets = [0, 0], sizes = [16, 8], strides = [1, 1]} : vector<16x32xf32> to vector<16x8xf32>
    %57 = vector.extract_strided_slice %54 {offsets = [0, 0], sizes = [16, 8], strides = [1, 1]} : vector<16x32xf32> to vector<16x8xf32>
    %cst_12 = arith.constant dense<0.000000e+00> : vector<16x16xf32>
    %58 = tpu.matmul %55, %56, %cst_12 {dimension_numbers = #tpu.dot_dimension_numbers<[1], [1], [0], [0], [0, 0, 1, 0], [], []>} : vector<16x8xf32>, vector<16x8xf32>, vector<16x16xf32> -> vector<16x16xf32>
    %cst_13 = arith.constant 0.353553385 : f32
    %59 = vector.broadcast %cst_13 : f32 to vector<16x16xf32>
    %60 = arith.mulf %58, %59 : vector<16x16xf32>
    %61 = arith.addf %60, %26 : vector<16x16xf32>
    %cst_14 = arith.constant dense<0xFF800000> : vector<16xf32>
    %62 = vector.multi_reduction <maximumf>, %61, %cst_14 [1] : vector<16x16xf32> to vector<16xf32>
    %63 = vector.shape_cast %62 : vector<16xf32> to vector<16x1xf32>
    %64 = vector.broadcast %63 : vector<16x1xf32> to vector<16x16xf32>
    %65 = arith.subf %61, %64 : vector<16x16xf32>
    %66 = math.exp %65 : vector<16x16xf32>
    %cst_15 = arith.constant dense<0.000000e+00> : vector<16xf32>
    %67 = vector.multi_reduction <add>, %66, %cst_15 [1] : vector<16x16xf32> to vector<16xf32>
    %68 = vector.shape_cast %67 : vector<16xf32> to vector<16x1xf32>
    %69 = tpu.reciprocal %68 {approx = true} : vector<16x1xf32> -> vector<16x1xf32>
    %70 = arith.mulf %68, %69 : vector<16x1xf32>
    %cst_16 = arith.constant 2.000000e+00 : f32
    %71 = vector.broadcast %cst_16 : f32 to vector<16x1xf32>
    %72 = arith.subf %71, %70 : vector<16x1xf32>
    %73 = arith.mulf %69, %72 : vector<16x1xf32>
    %74 = vector.broadcast %73 : vector<16x1xf32> to vector<16x16xf32>
    %75 = arith.mulf %66, %74 : vector<16x16xf32>
    %cst_17 = arith.constant dense<0.000000e+00> : vector<16x8xf32>
    %76 = tpu.matmul %75, %57, %cst_17 {dimension_numbers = #tpu.dot_dimension_numbers<[1], [0], [0], [1], [0, 0, 1, 1], [], []>} : vector<16x16xf32>, vector<16x8xf32>, vector<16x8xf32> -> vector<16x8xf32>
    %77 = vector.extract_strided_slice %52 {offsets = [0, 8], sizes = [16, 8], strides = [1, 1]} : vector<16x32xf32> to vector<16x8xf32>
    %78 = vector.extract_strided_slice %53 {offsets = [0, 8], sizes = [16, 8], strides = [1, 1]} : vector<16x32xf32> to vector<16x8xf32>
    %79 = vector.extract_strided_slice %54 {offsets = [0, 8], sizes = [16, 8], strides = [1, 1]} : vector<16x32xf32> to vector<16x8xf32>
    %cst_18 = arith.constant dense<0.000000e+00> : vector<16x16xf32>
    %80 = tpu.matmul %77, %78, %cst_18 {dimension_numbers = #tpu.dot_dimension_numbers<[1], [1], [0], [0], [0, 0, 1, 0], [], []>} : vector<16x8xf32>, vector<16x8xf32>, vector<16x16xf32> -> vector<16x16xf32>
    %cst_19 = arith.constant 0.353553385 : f32
    %81 = vector.broadcast %cst_19 : f32 to vector<16x16xf32>
    %82 = arith.mulf %80, %81 : vector<16x16xf32>
    %83 = arith.addf %82, %26 : vector<16x16xf32>
    %cst_20 = arith.constant dense<0xFF800000> : vector<16xf32>
    %84 = vector.multi_reduction <maximumf>, %83, %cst_20 [1] : vector<16x16xf32> to vector<16xf32>
    %85 = vector.shape_cast %84 : vector<16xf32> to vector<16x1xf32>
    %86 = vector.broadcast %85 : vector<16x1xf32> to vector<16x16xf32>
    %87 = arith.subf %83, %86 : vector<16x16xf32>
    %88 = math.exp %87 : vector<16x16xf32>
    %cst_21 = arith.constant dense<0.000000e+00> : vector<16xf32>
    %89 = vector.multi_reduction <add>, %88, %cst_21 [1] : vector<16x16xf32> to vector<16xf32>
    %90 = vector.shape_cast %89 : vector<16xf32> to vector<16x1xf32>
    %91 = tpu.reciprocal %90 {approx = true} : vector<16x1xf32> -> vector<16x1xf32>
    %92 = arith.mulf %90, %91 : vector<16x1xf32>
    %cst_22 = arith.constant 2.000000e+00 : f32
    %93 = vector.broadcast %cst_22 : f32 to vector<16x1xf32>
    %94 = arith.subf %93, %92 : vector<16x1xf32>
    %95 = arith.mulf %91, %94 : vector<16x1xf32>
    %96 = vector.broadcast %95 : vector<16x1xf32> to vector<16x16xf32>
    %97 = arith.mulf %88, %96 : vector<16x16xf32>
    %cst_23 = arith.constant dense<0.000000e+00> : vector<16x8xf32>
    %98 = tpu.matmul %97, %79, %cst_23 {dimension_numbers = #tpu.dot_dimension_numbers<[1], [0], [0], [1], [0, 0, 1, 1], [], []>} : vector<16x16xf32>, vector<16x8xf32>, vector<16x8xf32> -> vector<16x8xf32>
    %99 = vector.extract_strided_slice %52 {offsets = [0, 16], sizes = [16, 8], strides = [1, 1]} : vector<16x32xf32> to vector<16x8xf32>
    %100 = vector.extract_strided_slice %53 {offsets = [0, 16], sizes = [16, 8], strides = [1, 1]} : vector<16x32xf32> to vector<16x8xf32>
    %101 = vector.extract_strided_slice %54 {offsets = [0, 16], sizes = [16, 8], strides = [1, 1]} : vector<16x32xf32> to vector<16x8xf32>
    %cst_24 = arith.constant dense<0.000000e+00> : vector<16x16xf32>
    %102 = tpu.matmul %99, %100, %cst_24 {dimension_numbers = #tpu.dot_dimension_numbers<[1], [1], [0], [0], [0, 0, 1, 0], [], []>} : vector<16x8xf32>, vector<16x8xf32>, vector<16x16xf32> -> vector<16x16xf32>
    %cst_25 = arith.constant 0.353553385 : f32
    %103 = vector.broadcast %cst_25 : f32 to vector<16x16xf32>
    %104 = arith.mulf %102, %103 : vector<16x16xf32>
    %105 = arith.addf %104, %26 : vector<16x16xf32>
    %cst_26 = arith.constant dense<0xFF800000> : vector<16xf32>
    %106 = vector.multi_reduction <maximumf>, %105, %cst_26 [1] : vector<16x16xf32> to vector<16xf32>
    %107 = vector.shape_cast %106 : vector<16xf32> to vector<16x1xf32>
    %108 = vector.broadcast %107 : vector<16x1xf32> to vector<16x16xf32>
    %109 = arith.subf %105, %108 : vector<16x16xf32>
    %110 = math.exp %109 : vector<16x16xf32>
    %cst_27 = arith.constant dense<0.000000e+00> : vector<16xf32>
    %111 = vector.multi_reduction <add>, %110, %cst_27 [1] : vector<16x16xf32> to vector<16xf32>
    %112 = vector.shape_cast %111 : vector<16xf32> to vector<16x1xf32>
    %113 = tpu.reciprocal %112 {approx = true} : vector<16x1xf32> -> vector<16x1xf32>
    %114 = arith.mulf %112, %113 : vector<16x1xf32>
    %cst_28 = arith.constant 2.000000e+00 : f32
    %115 = vector.broadcast %cst_28 : f32 to vector<16x1xf32>
    %116 = arith.subf %115, %114 : vector<16x1xf32>
    %117 = arith.mulf %113, %116 : vector<16x1xf32>
    %118 = vector.broadcast %117 : vector<16x1xf32> to vector<16x16xf32>
    %119 = arith.mulf %110, %118 : vector<16x16xf32>
    %cst_29 = arith.constant dense<0.000000e+00> : vector<16x8xf32>
    %120 = tpu.matmul %119, %101, %cst_29 {dimension_numbers = #tpu.dot_dimension_numbers<[1], [0], [0], [1], [0, 0, 1, 1], [], []>} : vector<16x16xf32>, vector<16x8xf32>, vector<16x8xf32> -> vector<16x8xf32>
    %121 = vector.extract_strided_slice %52 {offsets = [0, 24], sizes = [16, 8], strides = [1, 1]} : vector<16x32xf32> to vector<16x8xf32>
    %122 = vector.extract_strided_slice %53 {offsets = [0, 24], sizes = [16, 8], strides = [1, 1]} : vector<16x32xf32> to vector<16x8xf32>
    %123 = vector.extract_strided_slice %54 {offsets = [0, 24], sizes = [16, 8], strides = [1, 1]} : vector<16x32xf32> to vector<16x8xf32>
    %cst_30 = arith.constant dense<0.000000e+00> : vector<16x16xf32>
    %124 = tpu.matmul %121, %122, %cst_30 {dimension_numbers = #tpu.dot_dimension_numbers<[1], [1], [0], [0], [0, 0, 1, 0], [], []>} : vector<16x8xf32>, vector<16x8xf32>, vector<16x16xf32> -> vector<16x16xf32>
    %cst_31 = arith.constant 0.353553385 : f32
    %125 = vector.broadcast %cst_31 : f32 to vector<16x16xf32>
    %126 = arith.mulf %124, %125 : vector<16x16xf32>
    %127 = arith.addf %126, %26 : vector<16x16xf32>
    %cst_32 = arith.constant dense<0xFF800000> : vector<16xf32>
    %128 = vector.multi_reduction <maximumf>, %127, %cst_32 [1] : vector<16x16xf32> to vector<16xf32>
    %129 = vector.shape_cast %128 : vector<16xf32> to vector<16x1xf32>
    %130 = vector.broadcast %129 : vector<16x1xf32> to vector<16x16xf32>
    %131 = arith.subf %127, %130 : vector<16x16xf32>
    %132 = math.exp %131 : vector<16x16xf32>
    %cst_33 = arith.constant dense<0.000000e+00> : vector<16xf32>
    %133 = vector.multi_reduction <add>, %132, %cst_33 [1] : vector<16x16xf32> to vector<16xf32>
    %134 = vector.shape_cast %133 : vector<16xf32> to vector<16x1xf32>
    %135 = tpu.reciprocal %134 {approx = true} : vector<16x1xf32> -> vector<16x1xf32>
    %136 = arith.mulf %134, %135 : vector<16x1xf32>
    %cst_34 = arith.constant 2.000000e+00 : f32
    %137 = vector.broadcast %cst_34 : f32 to vector<16x1xf32>
    %138 = arith.subf %137, %136 : vector<16x1xf32>
    %139 = arith.mulf %135, %138 : vector<16x1xf32>
    %140 = vector.broadcast %139 : vector<16x1xf32> to vector<16x16xf32>
    %141 = arith.mulf %132, %140 : vector<16x16xf32>
    %cst_35 = arith.constant dense<0.000000e+00> : vector<16x8xf32>
    %142 = tpu.matmul %141, %123, %cst_35 {dimension_numbers = #tpu.dot_dimension_numbers<[1], [0], [0], [1], [0, 0, 1, 1], [], []>} : vector<16x16xf32>, vector<16x8xf32>, vector<16x8xf32> -> vector<16x8xf32>
    %143 = tpu.concatenate %76, %98, %120, %142 in 1 : vector<16x8xf32>, vector<16x8xf32>, vector<16x8xf32>, vector<16x8xf32> -> vector<16x32xf32>
    %cst_36 = arith.constant dense<0.000000e+00> : vector<16x32xf32>
    %144 = tpu.matmul %143, %3, %cst_36 {dimension_numbers = #tpu.dot_dimension_numbers<[1], [0], [0], [1], [0, 0, 1, 1], [], []>} : vector<16x32xf32>, vector<32x32xf32>, vector<16x32xf32> -> vector<16x32xf32>
    %145 = vector.broadcast %8 : vector<1x32xf32> to vector<16x32xf32>
    %146 = arith.addf %144, %145 : vector<16x32xf32>
    %147 = arith.addf %0, %146 : vector<16x32xf32>
    %cst_37 = arith.constant dense<0.000000e+00> : vector<16xf32>
    %148 = vector.multi_reduction <add>, %147, %cst_37 [1] : vector<16x32xf32> to vector<16xf32>
    %149 = vector.shape_cast %148 : vector<16xf32> to vector<16x1xf32>
    %cst_38 = arith.constant 3.200000e+01 : f32
    %150 = vector.broadcast %cst_38 : f32 to vector<16x1xf32>
    %151 = arith.divf %149, %150 : vector<16x1xf32>
    %152 = vector.broadcast %151 : vector<16x1xf32> to vector<16x32xf32>
    %153 = arith.subf %147, %152 : vector<16x32xf32>
    %154 = arith.mulf %153, %153 : vector<16x32xf32>
    %cst_39 = arith.constant dense<0.000000e+00> : vector<16xf32>
    %155 = vector.multi_reduction <add>, %154, %cst_39 [1] : vector<16x32xf32> to vector<16xf32>
    %156 = vector.shape_cast %155 : vector<16xf32> to vector<16x1xf32>
    %cst_40 = arith.constant 3.200000e+01 : f32
    %157 = vector.broadcast %cst_40 : f32 to vector<16x1xf32>
    %158 = arith.divf %156, %157 : vector<16x1xf32>
    %159 = vector.broadcast %151 : vector<16x1xf32> to vector<16x32xf32>
    %160 = arith.subf %147, %159 : vector<16x32xf32>
    %cst_41 = arith.constant 9.99999974E-6 : f32
    %161 = vector.broadcast %cst_41 : f32 to vector<16x1xf32>
    %162 = arith.addf %158, %161 : vector<16x1xf32>
    %163 = math.rsqrt %162 : vector<16x1xf32>
    %164 = vector.broadcast %163 : vector<16x1xf32> to vector<16x32xf32>
    %165 = arith.mulf %160, %164 : vector<16x32xf32>
    %166 = vector.broadcast %13 : vector<1x32xf32> to vector<16x32xf32>
    %167 = arith.mulf %165, %166 : vector<16x32xf32>
    %168 = vector.broadcast %14 : vector<1x32xf32> to vector<16x32xf32>
    %169 = arith.addf %167, %168 : vector<16x32xf32>
    %cst_42 = arith.constant dense<0.000000e+00> : vector<16x64xf32>
    %170 = tpu.matmul %169, %4, %cst_42 {dimension_numbers = #tpu.dot_dimension_numbers<[1], [0], [0], [1], [0, 0, 1, 1], [], []>} : vector<16x32xf32>, vector<32x64xf32>, vector<16x64xf32> -> vector<16x64xf32>
    %171 = vector.broadcast %9 : vector<1x64xf32> to vector<16x64xf32>
    %172 = arith.addf %170, %171 : vector<16x64xf32>
    %cst_43 = arith.constant 5.000000e-01 : f32
    %173 = vector.broadcast %cst_43 : f32 to vector<16x64xf32>
    %174 = arith.mulf %173, %172 : vector<16x64xf32>
    %cst_44 = arith.constant 4.471500e-02 : f32
    %175 = vector.broadcast %cst_44 : f32 to vector<16x64xf32>
    %176 = arith.mulf %175, %172 : vector<16x64xf32>
    %177 = arith.mulf %176, %172 : vector<16x64xf32>
    %178 = arith.mulf %177, %172 : vector<16x64xf32>
    %179 = arith.addf %172, %178 : vector<16x64xf32>
    %cst_45 = arith.constant 0.797884583 : f32
    %180 = vector.broadcast %cst_45 : f32 to vector<16x64xf32>
    %181 = arith.mulf %180, %179 : vector<16x64xf32>
    %182 = math.tanh %181 : vector<16x64xf32>
    %cst_46 = arith.constant 1.000000e+00 : f32
    %183 = vector.broadcast %cst_46 : f32 to vector<16x64xf32>
    %184 = arith.addf %183, %182 : vector<16x64xf32>
    %185 = arith.mulf %174, %184 : vector<16x64xf32>
    %cst_47 = arith.constant dense<0.000000e+00> : vector<16x32xf32>
    %186 = tpu.matmul %185, %5, %cst_47 {dimension_numbers = #tpu.dot_dimension_numbers<[1], [1], [0], [0], [0, 0, 1, 0], [], []>} : vector<16x64xf32>, vector<32x64xf32>, vector<16x32xf32> -> vector<16x32xf32>
    %187 = vector.broadcast %10 : vector<1x32xf32> to vector<16x32xf32>
    %188 = arith.addf %186, %187 : vector<16x32xf32>
    %189 = arith.addf %147, %188 : vector<16x32xf32>
    %c0_48 = arith.constant 0 : index
    %c0_49 = arith.constant 0 : index
    %190 = vector.load %arg2[%c0_48, %c0_49] : memref<16x32xf32, #tpu.memory_space<vmem>>, vector<16x32xf32>
    tpu.vector_store %arg2[%c0_48, %c0_49], %189 {strides = array<i32>} : memref<16x32xf32, #tpu.memory_space<vmem>>, vector<16x32xf32>,
    return
  }
}

</mosaic_0001>

<bundles_post_ra>
// kernel: tpu_custom_call.1
= control target key start
LH: loop header
LB: loop body
LE: loop exit
PB: predicated region body
PF: predicated region fallthrough
CT: control target
= control target key end

     0   :  { %7 = vsyncpa [#allocation3], 0  ;;  %s2174_s0 = inlined_call_operand.hbm [shape: f32[16,32], index: 0, kind: input, shape index: {}]   ;;  %s2175_s1 = inlined_call_operand.hbm [shape: f32[40,256], index: 1, kind: input, shape index: {}]   ;;  %s2176_s2 = inlined_call_operand.hbm [shape: f32[16,32], index: 2, kind: output, shape index: {}]  }
   0x1   :  { %8 = vsyncpa [#allocation6], 0 }
   0x2   :  { %9 = vsyncpa [#allocation4], 0  ;;  %s1900_s9 = smov [#allocation2]   ;;  %s1828_s13 = scalar_lea.hbm %s2174_s0, 256 }
   0x3   :  { %s15_s10 = sshll.u32 %s1900_s9, 4  ;;  %p1829_p0 = scmp.ne.s32.totalorder %s2174_s0, %s1828_s13  ;;  %s16_s10 = int_to_ptr.vmem [resolvable:$true] %s15_s10 }
   0x4   :  { %p1832_p1 = scmp.lt.u32.totalorder %s1828_s13, %s2174_s0 }
   0x6   :  { %p1834_p2 = pnand %p1832_p1, %p1829_p0 }
   0x8   :  { %1837 = shalt.err (!%p1834_p2)
}
   0x9   :  { %s1838_s18 = scalar_lea.vmem %s16_s10, 256  ;;  %p1843_p4 = scmp.lt.s32.totalorder %s16_s10, %s16_s10 }
   0xa   :  { %p1839_p3 = scmp.ne.s32.totalorder %s16_s10, %s1838_s18  ;;  %p1844_p5 = scmp.lt.s32.totalorder %s1838_s18, %s1838_s18 }
   0xc   :  { %p1845_p6 = por %p1844_p5, %p1843_p4 }
   0xe   :  { %p1846_p7 = pnand %p1845_p6, %p1839_p3 }
  0x10   :  { %1849 = shalt.err (!%p1846_p7)
}
  0x11   :  { %s1901_s19 = smov 128   ;;  %s1902_s20 = smov 8  }
  0x12   :  { %21 = dma.hbm_to_vmem [thread:$0]  %s2174_s0, 256, %s16_s10, [#allocation3], %s1901_s19, %s1901_s19, %s1902_s20  }
  0x13   :  { %s1903_s23 = smov [#allocation5]   ;;  %s1850_s27 = scalar_lea.hbm %s2175_s1, 1280 }
  0x14   :  { %s27_s24 = sshll.u32 %s1903_s23, 4  ;;  %p1851_p8 = scmp.ne.s32.totalorder %s2175_s1, %s1850_s27  ;;  %s28_s24 = int_to_ptr.vmem [resolvable:$true] %s27_s24 }
  0x15   :  { %p1854_p9 = scmp.lt.u32.totalorder %s1850_s27, %s2175_s1 }
  0x17   :  { %p1856_p10 = pnand %p1854_p9, %p1851_p8 }
  0x19   :  { %1859 = shalt.err (!%p1856_p10)
}
  0x1a   :  { %s1860_s4 = scalar_lea.vmem %s28_s24, 1280  ;;  %p1865_p12 = scmp.lt.s32.totalorder %s28_s24, %s28_s24 }
  0x1b   :  { %p1861_p11 = scmp.ne.s32.totalorder %s28_s24, %s1860_s4  ;;  %p1866_p13 = scmp.lt.s32.totalorder %s1860_s4, %s1860_s4 }
  0x1d   :  { %p1867_p0 = por %p1866_p13, %p1865_p12 }
  0x1f   :  { %p1868_p1 = pnand %p1867_p0, %p1861_p11 }
  0x21   :  { %1871 = shalt.err (!%p1868_p1)
}
  0x22   :  { %s1904_s0 = smov 256   ;;  %s1905_s5 = smov 16  }
  0x23   :  { %33 = dma.hbm_to_vmem [thread:$0]  %s2175_s1, 1280, %s28_s24, [#allocation6], %s1904_s0, %s1904_s0, %s1905_s5  }
  0x24   :  { %1894 = dma.done.wait [#allocation3], 256  }
  0x25   :  { %1895 = vsyncadd [#allocation3], 4294967040 }
  0x26   :  { %1896 = dma.done.wait [#allocation6], 1280  }
  0x27   :  { %1897 = vsyncadd [#allocation6], 4294966016  ;;  %vm67_vm0 = vcmask 261120   ;;  %v1964_v0 = vld [vmem:[#allocation2] sm:$0xff]  ;;  %v1966_v1 = vld [vmem:[#allocation2 + $0x8] sm:$0xff]  ;;  %v51_v23 = vlaneseq  ;;  %vm198_vm1 = vcmask 64512  }
  0x28   :  { %v68_v2 = vsel %vm67_vm0, %v1964_v0, 0.0  ;;  %v71_v3 = vsel %vm67_vm0, %v1966_v1, 0.0  ;;  %v1976_v14 = vld [vmem:[#allocation5] sm:$0xff]  ;;  %v1978_v15 = vld [vmem:[#allocation5 + $0x10] sm:$0xff]  ;;  %s1906_s1 = smov 88   ;;  %s1907_s8 = smov 96   ;;  %vm2018_vm2 = vmpackc.low %vm198_vm1, %vm198_vm1 }
  0x29   :  { %69 = vadd.xlane.f32.xlu0 %v68_v2  ;;  %v1980_v16 = vld [vmem:[#allocation5 + $0x20] sm:$0xff]  ;;  %v1764_v17 = vpack.i.bf16 %v1978_v15, %v1976_v14  ;;  %v1627_v18 = vpack.c.bf16 %v1978_v15, %v1976_v14  ;;  %v1986_v19 = vld [vmem:[#allocation5 + $0x30] sm:$0xff]  ;;  %v1990_v27 = vshrl.u32 %v51_v23, 7  ;;  %s1908_s9 = smov 120   ;;  %v55_v61 = vand.u32 127, %v51_v23  ;;  %s1910_s10 = smov 56  }
  0x2a   :  { %v1631_v20 = vpack.c.bf16 %v1986_v19, %v1980_v16  ;;  %v1993_v30 = vld [vmem:[#allocation5 + $0x40] sm:$0xff]  ;;  %vm286_vm9 = vcmask 130048   ;;  %s1911_s11 = smov 64   ;;  %s1912_s12 = smov 80   ;;  %vm1060_vm10 = vcmask 195584   ;;  %vm1323_vm11 = vcmask 523264  }
  0x2b   :  { %1628 = vmatprep.subr.bf16.mxu1 %v1627_v18  ;;  %v97_v29 = vsub.s32 4, %v1990_v27  ;;  %v103_v31 = vsub.s32 5, %v1990_v27  ;;  %v109_v42 = vsub.s32 0, %v1990_v27  ;;  %v53_v60 = vadd.s32 8, %v1990_v27  ;;  %s1913_s13 = smov 112   ;;  %s1914_s14 = smov 48   ;;  %vm1692_vm12 = vmpackc.low %vm1323_vm11, %vm1323_vm11 }
  0x2c   :  { %1630 = vmatpush3.bf16.msra.mxu1 %v1627_v18  ;;  %v58_v63 = vshra.s32 %v55_v61, 3  ;;  %v56_v2 = vshra.s32 %v1990_v27, 3  ;;  %vm61_vm6 = vcmp.le.s32.totalorder %v55_v61, %v1990_v27  ;;  %s1915_s15 = smov 104   ;;  %s1916_s16 = smov 72  }
  0x2d   :  { %72 = vadd.xlane.f32.xlu0 %v71_v3  ;;  %1632 = vmatprep.subr.bf16.mxu1 %v1631_v20  ;;  %v98_v32 = vrot.slane %v1993_v30, %v97_v29  ;;  %v104_v35 = vrot.slane %v1993_v30, %v103_v31  ;;  %v110_v43 = vrot.slane %v1993_v30, %v109_v42  ;;  %v57_v62 = vshra.s32 %v53_v60, 3  ;;  %s1917_s17 = smov 40   ;;  %s1918_s18 = smov 32  }
  0x2e   :  { %vm62_vm4 = vcmp.le.s32.totalorder %v55_v61, %v53_v60  ;;  %vm59_vm5 = vcmp.eq.s32.totalorder %v56_v2, %v58_v63  ;;  %s1919_s21 = smov 24   ;;  %s1920_s22 = smov [#allocation7]  }
  0x2f   :  { %vm60_vm3 = vcmp.eq.s32.totalorder %v57_v62, %v58_v63  ;;  %vm63_vm8 = vmand %vm59_vm5, %vm61_vm6  ;;  %s1422_s23 = sshll.u32 %s1920_s22, 4  ;;  %s1423_s23 = int_to_ptr.vmem [resolvable:$true] %s1422_s23 }
  0x30   :  { %1634 = vmatpush3.bf16.msra.mxu1 %v1631_v20  ;;  %vm64_vm7 = vmand %vm60_vm3, %vm62_vm4  ;;  %s1872_s24 = scalar_lea.vmem %s1423_s23, 256  ;;  %p1877_p3 = scmp.lt.s32.totalorder %s1423_s23, %s1423_s23 }
  0x31   :  { %p1873_p2 = scmp.ne.s32.totalorder %s1423_s23, %s1872_s24  ;;  %p1878_p4 = scmp.lt.s32.totalorder %s1872_s24, %s1872_s24 }
  0x33   :  { %p1879_p5 = por %p1878_p4, %p1877_p3 }
  0x35   :  { %p1880_p6 = pnand %p1879_p5, %p1873_p2 }
  0xb6   :  { %v70_v4 = vpop.xlane.xlu0 %69 }
  0xb7   :  { %v75_v5 = vmul.f32 0.03125, %v70_v4  ;;  %v1909_v4 = vmov -1e+10  }
  0xb9   :  { %v77_v6 = vsub.f32 %v1964_v0, %v75_v5  ;;  %v2037_v5 = vsel %vm64_vm7, 0.0, %v1909_v4 }
  0xba   :  { %v73_v7 = vpop.xlane.xlu0 %72 }
  0xbb   :  { %v76_v8 = vmul.f32 0.03125, %v73_v7  ;;  %v79_v9 = vmul.f32 %v77_v6, %v77_v6 }
  0xbd   :  { %v78_v10 = vsub.f32 %v1966_v1, %v76_v8  ;;  %v81_v11 = vsel %vm67_vm0, %v79_v9, 0.0  ;;  %v2039_v8 = vsel %vm63_vm8, 0.0, %v1909_v4 }
  0xbe   :  { %82 = vadd.xlane.f32.xlu1 %v81_v11 }
  0xbf   :  { %v80_v12 = vmul.f32 %v78_v10, %v78_v10 }
  0xc1   :  { %v84_v13 = vsel %vm67_vm0, %v80_v12, 0.0 }
  0xc2   :  { %85 = vadd.xlane.f32.xlu1 %v84_v13 }
 0x14b   :  { %v83_v21 = vpop.xlane.xlu1 %82 }
 0x14c   :  { %v87_v22 = vmul.f32 0.03125, %v83_v21 }
 0x14e   :  { %v89_v24 = vadd.f32 1e-05, %v87_v22 }
 0x14f   :  { %v86_v25 = vpop.xlane.xlu1 %85 }
 0x150   :  { %1784 = vrsqrt.f32 %v89_v24  ;;  %v88_v26 = vmul.f32 0.03125, %v86_v25 }
 0x152   :  { %v90_v28 = vadd.f32 1e-05, %v88_v26 }
 0x154   :  { %1786 = vrsqrt.f32 %v90_v28 }
 0x15a   :  { %v1785_v33 = vpop.eup %1784 }
 0x15b   :  { %v93_v34 = vmul.f32 %v1785_v33, %v77_v6 }
 0x15d   :  { %v99_v36 = vmul.f32 %v98_v32, %v93_v34 }
 0x15e   :  { %v1787_v37 = vpop.eup %1786 }
 0x15f   :  { %v94_v38 = vmul.f32 %v1787_v37, %v78_v10  ;;  %v105_v39 = vadd.f32 %v104_v35, %v99_v36 }
 0x161   :  { %v100_v40 = vmul.f32 %v98_v32, %v94_v38  ;;  %1535 = vmatprep.mubr.msk.f32.mxu1 %vm67_vm0, %v105_v39 }
 0x163   :  { %v106_v41 = vadd.f32 %v104_v35, %v100_v40 }
 0x165   :  { %1536 = vmatmul.mubr.msk.f32.vlgmr.msra.gmra.mrb[0].mxu1 %vm67_vm0, %v106_v41 }
 0x238   :  { %v1537_v44 = vpop.f32.mrb[0].mxu1 }
 0x239   :  { %v2002_v45 = vadd.f32 %v1537_v44, %v110_v43  ;;  %v183_v46 = vpop.f32.mrb[1].mxu1 }
 0x23a   :  { %v2004_v47 = vadd.f32 %v183_v46, %v110_v43 }
 0x23c   :  { %1542 = vmatprep.mubr.msk.f32.mxu1 %vm198_vm1, %v2004_v47  ;;  %v2010_v48 = vpack.i.bf16 %v2002_v45, %v2004_v47 }
 0x23e   :  { %1730 = vrot.lane.b32.xlu1 %v2010_v48, %s1906_s1  ;;  %1725 = vrot.lane.b32.xlu0 %v2010_v48, %s1907_s8 }
 0x242   :  { %402 = vrot.lane.b32.xlu1 %v2004_v47, %s1908_s9 }
 0x246   :  { %404 = vrot.lane.b32.xlu1 %v2002_v45, %s1908_s9 }
 0x2b0   :  { %v1731_v49 = vpop.permute.xlu1 %1730  ;;  %v1726_v50 = vpop.permute.xlu0 %1725 }
 0x2b1   :  { %v1733_v51 = vunpack.i.h.bf16 %v1731_v49  ;;  %v1732_v52 = vunpack.i.l.bf16 %v1731_v49  ;;  %v1728_v53 = vunpack.i.h.bf16 %v1726_v50  ;;  %v1727_v54 = vunpack.i.l.bf16 %v1726_v50 }
 0x2b3   :  { %v1635_v56 = vpack.c.bf16 %v1728_v53, %v1727_v54  ;;  %v1645_v57 = vpack.c.bf16 %v1733_v51, %v1732_v52 }
 0x2b4   :  { %v403_v58 = vpop.permute.xlu1 %402 }
 0x2b5   :  { %1637 = vmatprep.subr.msk.bf16.mxu1 %vm2018_vm2, %v1635_v56 }
 0x2b6   :  { %1640 = vmatpush3.bf16.xpose.msk.msra.mxu1 %vm2018_vm2, %v1635_v56 }
 0x2b7   :  { %1647 = vmatprep.subr.msk.bf16.mxu1 %vm2018_vm2, %v1645_v57 }
 0x2b8   :  { %v405_v59 = vpop.permute.xlu1 %404 }
 0x2bd   :  { %1543 = vmatmul.mubr.msk.f32.vlgmr.msra.gmra.mrb[2].mxu1 %vm198_vm1, %v2002_v45 }
 0x2be   :  { %1650 = vmatpush3.bf16.xpose.msk.msra.mxu1 %vm2018_vm2, %v1645_v57  ;;  %1556 = vmatprep.mubr.msk.f32.mxu1 %vm198_vm1, %v403_v58 }
 0x2c5   :  { %1557 = vmatmul.mubr.msk.f32.vlgmr.msra.gmra.mrb[4].mxu1 %vm198_vm1, %v405_v59 }
 0x390   :  { %v1544_v3 = vpop.f32.mrb[2].mxu1 }
 0x391   :  { %v283_v6 = vmul.f32 0.35355338, %v1544_v3  ;;  %v273_v7 = vpop.f32.mrb[3].mxu1 }
 0x392   :  { %v282_v9 = vmul.f32 0.35355338, %v273_v7 }
 0x393   :  { %v285_v10 = vadd.f32 %v283_v6, %v2037_v5 }
 0x394   :  { %v284_v11 = vadd.f32 %v282_v9, %v2039_v8 }
 0x395   :  { %v290_v12 = vsel %vm286_vm9, %v285_v10, -inf }
 0x396   :  { %291 = vmax.xlane.f32.xlu1 %v290_v12  ;;  %v287_v13 = vsel %vm286_vm9, %v284_v11, -inf }
 0x397   :  { %288 = vmax.xlane.f32.xlu0 %v287_v13 }
 0x398   :  { %v1558_v18 = vpop.f32.mrb[4].mxu1 }
 0x399   :  { %v484_v20 = vpop.f32.mrb[5].mxu1  ;;  %v494_v21 = vmul.f32 0.35355338, %v1558_v18 }
 0x39a   :  { %v493_v22 = vmul.f32 0.35355338, %v484_v20 }
 0x39b   :  { %v496_v25 = vadd.f32 %v494_v21, %v2037_v5 }
 0x39c   :  { %v495_v23 = vadd.f32 %v493_v22, %v2039_v8 }
 0x39d   :  { %v500_v26 = vsel %vm286_vm9, %v496_v25, -inf }
 0x39e   :  { %v497_v24 = vsel %vm286_vm9, %v495_v23, -inf }
 0x39f   :  { %498 = vmax.xlane.f32.xlu0 %v497_v24 }
 0x3a3   :  { %501 = vmax.xlane.f32.xlu0 %v500_v26 }
 0x423   :  { %v292_v28 = vpop.xlane.xlu1 %291 }
 0x424   :  { %v294_v29 = vsub.f32 %v285_v10, %v292_v28  ;;  %v289_v31 = vpop.xlane.xlu0 %288 }
 0x425   :  { %v293_v32 = vsub.f32 %v284_v11, %v289_v31 }
 0x426   :  { %v297_v33 = vmul.f32 1.442695, %v294_v29 }
 0x427   :  { %v295_v34 = vmul.f32 1.442695, %v293_v32 }
 0x428   :  { %1788 = vpow2.f32 %v297_v33 }
 0x429   :  { %1790 = vpow2.f32 %v295_v34 }
 0x42c   :  { %v499_v35 = vpop.xlane.xlu0 %498 }
 0x42d   :  { %v503_v36 = vsub.f32 %v495_v23, %v499_v35 }
 0x42f   :  { %v505_v37 = vmul.f32 1.442695, %v503_v36 }
 0x430   :  { %v502_v38 = vpop.xlane.xlu0 %501 }
 0x431   :  { %1792 = vpow2.f32 %v505_v37  ;;  %v504_v39 = vsub.f32 %v496_v25, %v502_v38 }
 0x432   :  { %v1789_v40 = vpop.eup %1788 }
 0x433   :  { %v1791_v41 = vpop.eup %1790  ;;  %v507_v42 = vmul.f32 1.442695, %v504_v39  ;;  %v302_v43 = vsel %vm286_vm9, %v1789_v40, 0.0 }
 0x434   :  { %303 = vadd.xlane.f32.xlu1 %v302_v43  ;;  %v299_v44 = vsel %vm286_vm9, %v1791_v41, 0.0 }
 0x435   :  { %1794 = vpow2.f32 %v507_v42  ;;  %300 = vadd.xlane.f32.xlu0 %v299_v44 }
 0x43b   :  { %v1793_v46 = vpop.eup %1792 }
 0x43c   :  { %v509_v49 = vsel %vm286_vm9, %v1793_v46, 0.0 }
 0x43d   :  { %510 = vadd.xlane.f32.xlu0 %v509_v49 }
 0x43f   :  { %v1795_v50 = vpop.eup %1794 }
 0x440   :  { %v512_v51 = vsel %vm286_vm9, %v1795_v50, 0.0 }
 0x441   :  { %513 = vadd.xlane.f32.xlu1 %v512_v51 }
 0x452   :  { %1740 = vrot.lane.b32.xlu1 %v2010_v48, %s1910_s10 }
 0x453   :  { %1735 = vrot.lane.b32.xlu0 %v2010_v48, %s1911_s11 }
 0x456   :  { %1745 = vrot.lane.b32.xlu1 %v2010_v48, %s1912_s12 }
 0x457   :  { %614 = vrot.lane.b32.xlu0 %v2002_v45, %s1913_s13 }
 0x45a   :  { %612 = vrot.lane.b32.xlu1 %v2004_v47, %s1913_s13 }
 0x4c1   :  { %v304_v52 = vpop.xlane.xlu1 %303 }
 0x4c2   :  { %1796 = vrcp.f32 %v304_v52  ;;  %v301_v53 = vpop.xlane.xlu0 %300 }
 0x4c3   :  { %1798 = vrcp.f32 %v301_v53 }
 0x4ca   :  { %v511_v54 = vpop.xlane.xlu0 %510 }
 0x4cb   :  { %1800 = vrcp.f32 %v511_v54 }
 0x4cc   :  { %v1797_v56 = vpop.eup %1796 }
 0x4cd   :  { %v1799_v57 = vpop.eup %1798  ;;  %v308_v58 = vmul.f32 %v1797_v56, %v304_v52 }
 0x4ce   :  { %v307_v59 = vmul.f32 %v1799_v57, %v301_v53  ;;  %v514_v60 = vpop.xlane.xlu1 %513  ;;  %v1736_v61 = vpop.permute.xlu0 %1735 }
 0x4cf   :  { %v310_v62 = vsub.f32 2.0, %v308_v58  ;;  %1802 = vrcp.f32 %v514_v60  ;;  %v1738_v63 = vunpack.i.h.bf16 %v1736_v61  ;;  %v1737_v2 = vunpack.i.l.bf16 %v1736_v61 }
 0x4d0   :  { %v309_v3 = vsub.f32 2.0, %v307_v59 }
 0x4d1   :  { %v312_v4 = vmul.f32 %v1797_v56, %v310_v62  ;;  %v1641_v6 = vpack.c.bf16 %v1738_v63, %v1737_v2 }
 0x4d2   :  { %v1741_v7 = vpop.permute.xlu1 %1740  ;;  %v311_v9 = vmul.f32 %v1799_v57, %v309_v3  ;;  %v615_v37 = vpop.permute.xlu0 %614 }
 0x4d3   :  { %v1743_v10 = vunpack.i.h.bf16 %v1741_v7  ;;  %v1742_v11 = vunpack.i.l.bf16 %v1741_v7  ;;  %1642 = vmatprep.subr.bf16.mxu0 %v1641_v6  ;;  %v314_v18 = vmul.f32 %v1789_v40, %v312_v4 }
 0x4d4   :  { %1644 = vmatpush3.bf16.msra.mxu0 %v1641_v6  ;;  %v313_v12 = vmul.f32 %v1791_v41, %v311_v9 }
 0x4d5   :  { %v1801_v13 = vpop.eup %1800  ;;  %v1651_v20 = vpack.c.bf16 %v1743_v10, %v1742_v11 }
 0x4d6   :  { %v517_v21 = vmul.f32 %v1801_v13, %v511_v54  ;;  %v1746_v22 = vpop.permute.xlu1 %1745  ;;  %1549 = vmatprep.mubr.msk.f32.mxu0 %vm286_vm9, %v313_v12 }
 0x4d7   :  { %v1748_v23 = vunpack.i.h.bf16 %v1746_v22  ;;  %v1747_v24 = vunpack.i.l.bf16 %v1746_v22  ;;  %1550 = vmatmul.mubr.msk.f32.vlgmr.msra.gmra.mrb[0].mxu0 %vm286_vm9, %v314_v18  ;;  %1652 = vmatprep.subr.bf16.mxu0 %v1651_v20 }
 0x4d8   :  { %v519_v25 = vsub.f32 2.0, %v517_v21  ;;  %1654 = vmatpush3.bf16.msra.mxu0 %v1651_v20 }
 0x4d9   :  { %v1803_v26 = vpop.eup %1802  ;;  %v1655_v28 = vpack.c.bf16 %v1748_v23, %v1747_v24 }
 0x4da   :  { %v521_v29 = vmul.f32 %v1801_v13, %v519_v25  ;;  %v518_v31 = vmul.f32 %v1803_v26, %v514_v60  ;;  %v613_v36 = vpop.permute.xlu1 %612 }
 0x4db   :  { %1657 = vmatprep.subr.msk.bf16.mxu0 %vm2018_vm2, %v1655_v28 }
 0x4dc   :  { %v523_v32 = vmul.f32 %v1793_v46, %v521_v29  ;;  %v520_v33 = vsub.f32 2.0, %v518_v31 }
 0x4de   :  { %v522_v34 = vmul.f32 %v1803_v26, %v520_v33  ;;  %1563 = vmatprep.mubr.msk.f32.mxu0 %vm286_vm9, %v523_v32 }
 0x4e0   :  { %v524_v35 = vmul.f32 %v1795_v50, %v522_v34 }
 0x4e2   :  { %1564 = vmatmul.mubr.msk.f32.vlgmr.msra.gmra.mrb[2].mxu0 %vm286_vm9, %v524_v35 }
 0x4e3   :  { %1660 = vmatpush3.bf16.xpose.msk.msra.mxu0 %vm2018_vm2, %v1655_v28  ;;  %1570 = vmatprep.mubr.msk.f32.mxu0 %vm198_vm1, %v613_v36 }
 0x4ea   :  { %1571 = vmatmul.mubr.msk.f32.vlgmr.msra.gmra.mrb[4].mxu0 %vm198_vm1, %v615_v37 }
 0x5aa   :  { %v2069_v38 = vpop.f32.mrb[0].mxu0 }
 0x5ab   :  { %v2071_v39 = vpop.f32.mrb[1].mxu0 }
 0x5b5   :  { %v2073_v40 = vpop.f32.mrb[2].mxu0 }
 0x5b6   :  { %v2075_v41 = vpop.f32.mrb[3].mxu0 }
 0x5bd   :  { %v1572_v42 = vpop.f32.mrb[4].mxu0 }
 0x5be   :  { %v704_v43 = vmul.f32 0.35355338, %v1572_v42  ;;  %v694_v44 = vpop.f32.mrb[5].mxu0 }
 0x5bf   :  { %v703_v46 = vmul.f32 0.35355338, %v694_v44  ;;  %v1769_v44 = vpack.i.bf16 %v1986_v19, %v1980_v16 }
 0x5c0   :  { %v706_v49 = vadd.f32 %v704_v43, %v2037_v5 }
 0x5c1   :  { %v705_v50 = vadd.f32 %v703_v46, %v2039_v8 }
 0x5c2   :  { %v710_v51 = vsel %vm286_vm9, %v706_v49, -inf }
 0x5c3   :  { %711 = vmax.xlane.f32.xlu0 %v710_v51  ;;  %v707_v52 = vsel %vm286_vm9, %v705_v50, -inf }
 0x5c4   :  { %708 = vmax.xlane.f32.xlu1 %v707_v52 }
 0x5d5   :  { %1750 = vrot.lane.b32.xlu1 %v2010_v48, %s1914_s14 }
 0x5d9   :  { %822 = vrot.lane.b32.xlu1 %v2004_v47, %s1915_s15 }
 0x5dd   :  { %824 = vrot.lane.b32.xlu1 %v2002_v45, %s1915_s15 }
 0x650   :  { %v712_v53 = vpop.xlane.xlu0 %711 }
 0x651   :  { %v714_v54 = vsub.f32 %v706_v49, %v712_v53  ;;  %v709_v56 = vpop.xlane.xlu1 %708 }
 0x652   :  { %v713_v57 = vsub.f32 %v705_v50, %v709_v56 }
 0x653   :  { %v717_v58 = vmul.f32 1.442695, %v714_v54 }
 0x654   :  { %v715_v59 = vmul.f32 1.442695, %v713_v57 }
 0x655   :  { %1804 = vpow2.f32 %v717_v58  ;;  %v1751_v60 = vpop.permute.xlu1 %1750 }
 0x656   :  { %v1753_v61 = vunpack.i.h.bf16 %v1751_v60  ;;  %v1752_v62 = vunpack.i.l.bf16 %v1751_v60  ;;  %1806 = vpow2.f32 %v715_v59 }
 0x658   :  { %v1661_v63 = vpack.c.bf16 %v1753_v61, %v1752_v62 }
 0x659   :  { %v823_v28 = vpop.permute.xlu1 %822 }
 0x65a   :  { %1662 = vmatprep.subr.bf16.mxu1 %v1661_v63 }
 0x65b   :  { %1664 = vmatpush3.bf16.msra.mxu1 %v1661_v63 }
 0x65d   :  { %v825_v29 = vpop.permute.xlu1 %824 }
 0x65f   :  { %v1805_v2 = vpop.eup %1804 }
 0x660   :  { %v722_v3 = vsel %vm286_vm9, %v1805_v2, 0.0  ;;  %v1807_v47 = vpop.eup %1806 }
 0x661   :  { %723 = vadd.xlane.f32.xlu0 %v722_v3  ;;  %v719_v45 = vsel %vm286_vm9, %v1807_v47, 0.0 }
 0x665   :  { %720 = vadd.xlane.f32.xlu0 %v719_v45 }
 0x67b   :  { %1755 = vrot.lane.b32.xlu0 %v2010_v48, %s1916_s16 }
 0x6ee   :  { %v724_v4 = vpop.xlane.xlu0 %723 }
 0x6ef   :  { %1808 = vrcp.f32 %v724_v4 }
 0x6f2   :  { %v721_v6 = vpop.xlane.xlu0 %720 }
 0x6f3   :  { %1810 = vrcp.f32 %v721_v6 }
 0x6f6   :  { %v1756_v7 = vpop.permute.xlu0 %1755 }
 0x6f7   :  { %v1758_v9 = vunpack.i.h.bf16 %v1756_v7  ;;  %v1757_v10 = vunpack.i.l.bf16 %v1756_v7 }
 0x6f9   :  { %v1809_v11 = vpop.eup %1808  ;;  %v1665_v12 = vpack.c.bf16 %v1758_v9, %v1757_v10 }
 0x6fa   :  { %v728_v13 = vmul.f32 %v1809_v11, %v724_v4 }
 0x6fb   :  { %1667 = vmatprep.subr.msk.bf16.mxu1 %vm2018_vm2, %v1665_v12 }
 0x6fc   :  { %v730_v20 = vsub.f32 2.0, %v728_v13 }
 0x6fd   :  { %v1811_v18 = vpop.eup %1810 }
 0x6fe   :  { %v727_v21 = vmul.f32 %v1811_v18, %v721_v6  ;;  %v732_v23 = vmul.f32 %v1809_v11, %v730_v20 }
 0x700   :  { %v729_v22 = vsub.f32 2.0, %v727_v21  ;;  %v734_v26 = vmul.f32 %v1805_v2, %v732_v23 }
 0x702   :  { %v731_v24 = vmul.f32 %v1811_v18, %v729_v22 }
 0x704   :  { %v733_v25 = vmul.f32 %v1807_v47, %v731_v24 }
 0x706   :  { %1577 = vmatprep.mubr.msk.f32.mxu1 %vm286_vm9, %v733_v25 }
 0x707   :  { %1578 = vmatmul.mubr.msk.f32.vlgmr.msra.gmra.mrb[6].mxu1 %vm286_vm9, %v734_v26 }
 0x708   :  { %1670 = vmatpush3.bf16.xpose.msk.msra.mxu1 %vm2018_vm2, %v1665_v12  ;;  %1584 = vmatprep.mubr.msk.f32.mxu1 %vm198_vm1, %v823_v28 }
 0x70f   :  { %1585 = vmatmul.mubr.msk.f32.vlgmr.msra.gmra.mrb[8].mxu1 %vm198_vm1, %v825_v29 }
 0x7da   :  { %v1579_v31 = vpop.f32.mrb[6].mxu1 }
 0x7db   :  { %v813_v32 = vpop.f32.mrb[7].mxu1 }
 0x7e2   :  { %v1586_v33 = vpop.f32.mrb[8].mxu1 }
 0x7e3   :  { %v914_v34 = vmul.f32 0.35355338, %v1586_v33  ;;  %v904_v35 = vpop.f32.mrb[9].mxu1 }
 0x7e4   :  { %v913_v36 = vmul.f32 0.35355338, %v904_v35 }
 0x7e5   :  { %v916_v37 = vadd.f32 %v914_v34, %v2037_v5 }
 0x7e6   :  { %v915_v42 = vadd.f32 %v913_v36, %v2039_v8 }
 0x7e7   :  { %v920_v43 = vsel %vm286_vm9, %v916_v37, -inf }
 0x7e8   :  { %921 = vmax.xlane.f32.xlu0 %v920_v43  ;;  %v917_v55 = vsel %vm286_vm9, %v915_v42, -inf }
 0x7e9   :  { %918 = vmax.xlane.f32.xlu1 %v917_v55 }
 0x7fa   :  { %1760 = vrot.lane.b32.xlu1 %v2010_v48, %s1917_s17 }
 0x7fe   :  { %1770 = vrot.lane.b32.xlu1 %v1769_v44, %s1918_s18 }
 0x802   :  { %1034 = vrot.lane.b32.xlu1 %v2075_v41, %s1902_s20 }
 0x806   :  { %1036 = vrot.lane.b32.xlu1 %v2073_v40, %s1902_s20 }
 0x80a   :  { %1044 = vrot.lane.b32.xlu1 %v1579_v31, %s1905_s5 }
 0x875   :  { %v922_v5 = vpop.xlane.xlu0 %921 }
 0x876   :  { %v924_v8 = vsub.f32 %v916_v37, %v922_v5  ;;  %v919_v46 = vpop.xlane.xlu1 %918 }
 0x877   :  { %v923_v49 = vsub.f32 %v915_v42, %v919_v46 }
 0x878   :  { %v927_v50 = vmul.f32 1.442695, %v924_v8 }
 0x879   :  { %v925_v51 = vmul.f32 1.442695, %v923_v49 }
 0x87a   :  { %v1761_v48 = vpop.permute.xlu1 %1760 }
 0x87b   :  { %1812 = vpow2.f32 %v925_v51  ;;  %v1763_v52 = vunpack.i.h.bf16 %v1761_v48  ;;  %v1762_v16 = vunpack.i.l.bf16 %v1761_v48  ;;  %v43_v48 = vld [vmem:[#allocation5 + $0x8] sm:$0xff] }
 0x87c   :  { %1814 = vpow2.f32 %v927_v50 }
 0x87d   :  { %v1671_v19 = vpack.c.bf16 %v1763_v52, %v1762_v16  ;;  %v45_v52 = vld [vmem:[#allocation5 + $0x18] sm:$0xff] }
 0x87e   :  { %v1771_v4 = vpop.permute.xlu1 %1770  ;;  %v1683_v16 = vpack.c.bf16 %v45_v52, %v43_v48 }
 0x87f   :  { %1672 = vmatprep.subr.bf16.mxu0 %v1671_v19  ;;  %v1773_v14 = vunpack.i.h.bf16 %v1771_v4  ;;  %v1772_v15 = vunpack.i.l.bf16 %v1771_v4 }
 0x880   :  { %1674 = vmatpush3.bf16.msra.mxu0 %v1671_v19  ;;  %1684 = vmatprep.subr.bf16.mxu1 %v1683_v16  ;;  %v47_v19 = vld [vmem:[#allocation5 + $0x28] sm:$0xff] }
 0x881   :  { %v1679_v9 = vpack.c.bf16 %v1773_v14, %v1772_v15  ;;  %1686 = vmatpush3.bf16.msra.mxu1 %v1683_v16 }
 0x882   :  { %v1035_v13 = vpop.permute.xlu1 %1034 }
 0x883   :  { %v1056_v22 = vsel %vm198_vm1, %v2071_v39, %v1035_v13 }
 0x885   :  { %v1813_v41 = vpop.eup %1812 }
 0x886   :  { %v929_v53 = vsel %vm286_vm9, %v1813_v41, 0.0  ;;  %v1815_v40 = vpop.eup %1814  ;;  %v1037_v18 = vpop.permute.xlu1 %1036 }
 0x887   :  { %930 = vadd.xlane.f32.xlu0 %v929_v53  ;;  %v932_v54 = vsel %vm286_vm9, %v1815_v40, 0.0  ;;  %v1057_v24 = vsel %vm198_vm1, %v2069_v38, %v1037_v18 }
 0x88a   :  { %v1045_v20 = vpop.permute.xlu1 %1044 }
 0x88b   :  { %933 = vadd.xlane.f32.xlu0 %v932_v54  ;;  %v1059_v28 = vsel %vm286_vm9, %v1057_v24, %v1045_v20 }
 0x8a1   :  { %1765 = vrot.lane.b32.xlu0 %v1764_v17, %s1918_s18 }
 0x8a5   :  { %1042 = vrot.lane.b32.xlu0 %v813_v32, %s1905_s5  ;;  %v1065_v32 = vsub.s32 1, %v1990_v27 }
 0x8a7   :  { %v1066_v33 = vrot.slane %v1993_v30, %v1065_v32 }
 0x914   :  { %v931_v56 = vpop.xlane.xlu0 %930 }
 0x915   :  { %1816 = vrcp.f32 %v931_v56 }
 0x918   :  { %v934_v57 = vpop.xlane.xlu0 %933 }
 0x919   :  { %1818 = vrcp.f32 %v934_v57 }
 0x91c   :  { %v1766_v58 = vpop.permute.xlu0 %1765 }
 0x91d   :  { %v1768_v59 = vunpack.i.h.bf16 %v1766_v58  ;;  %v1767_v60 = vunpack.i.l.bf16 %v1766_v58 }
 0x91f   :  { %v1817_v61 = vpop.eup %1816  ;;  %v1675_v62 = vpack.c.bf16 %v1768_v59, %v1767_v60 }
 0x920   :  { %v937_v63 = vmul.f32 %v1817_v61, %v931_v56  ;;  %v1043_v21 = vpop.permute.xlu0 %1042 }
 0x921   :  { %1676 = vmatprep.subr.bf16.mxu0 %v1675_v62  ;;  %v1058_v25 = vsel %vm286_vm9, %v1056_v22, %v1043_v21  ;;  %v1206_v22 = vsub.s32 2, %v1990_v27 }
 0x922   :  { %v939_v2 = vsub.f32 2.0, %v937_v63  ;;  %v1200_v63 = vsub.s32 7, %v1990_v27 }
 0x923   :  { %v1819_v3 = vpop.eup %1818 }
 0x924   :  { %v941_v47 = vmul.f32 %v1817_v61, %v939_v2  ;;  %v938_v45 = vmul.f32 %v1819_v3, %v934_v57 }
 0x926   :  { %v943_v17 = vmul.f32 %v1813_v41, %v941_v47  ;;  %v940_v6 = vsub.f32 2.0, %v938_v45  ;;  %v49_v41 = vld [vmem:[#allocation5 + $0x38] sm:$0xff]  ;;  %v1201_v45 = vrot.slane %v1993_v30, %v1200_v63 }
 0x927   :  { %v1687_v53 = vpack.c.bf16 %v49_v41, %v47_v19  ;;  %v1779_v54 = vpack.i.bf16 %v49_v41, %v47_v19 }
 0x928   :  { %v942_v7 = vmul.f32 %v1819_v3, %v940_v6  ;;  %1591 = vmatprep.mubr.msk.f32.mxu0 %vm286_vm9, %v943_v17 }
 0x929   :  { %1688 = vmatprep.subr.bf16.mxu1 %v1687_v53 }
 0x92a   :  { %v944_v10 = vmul.f32 %v1815_v40, %v942_v7  ;;  %1690 = vmatpush3.bf16.msra.mxu1 %v1687_v53  ;;  %v1774_v40 = vpack.i.bf16 %v45_v52, %v43_v48 }
 0x92c   :  { %1592 = vmatmul.mubr.msk.f32.vlgmr.msra.gmra.mrb[6].mxu0 %vm286_vm9, %v944_v10 }
 0x92d   :  { %1678 = vmatpush3.bf16.msra.mxu0 %v1675_v62  ;;  %v1194_v62 = vsub.s32 6, %v1990_v27 }
 0x92e   :  { %1680 = vmatprep.subr.bf16.mxu0 %v1679_v9 }
 0x92f   :  { %v1195_v2 = vrot.slane %v1993_v30, %v1194_v62 }
 0x931   :  { %1682 = vmatpush3.bf16.msra.mxu0 %v1679_v9 }
 0x9ff   :  { %v1593_v11 = vpop.f32.mrb[6].mxu0 }
 0xa00   :  { %1052 = vrot.lane.b32.xlu1 %v1593_v11, %s1919_s21  ;;  %v1023_v12 = vpop.f32.mrb[7].mxu0 }
 0xa01   :  { %1050 = vrot.lane.b32.xlu0 %v1023_v12, %s1919_s21 }
 0xa72   :  { %v1053_v23 = vpop.permute.xlu1 %1052 }
 0xa73   :  { %v1051_v26 = vpop.permute.xlu0 %1050  ;;  %v1062_v31 = vsel %vm1060_vm10, %v1059_v28, %v1053_v23  ;;  %v1207_v23 = vrot.slane %v1993_v30, %v1206_v22 }
 0xa74   :  { %v1061_v29 = vsel %vm1060_vm10, %v1058_v25, %v1051_v26 }
 0xa75   :  { %1602 = vmatprep.mubr.msk.f32.mxu0 %vm67_vm0, %v1061_v29 }
 0xa76   :  { %1603 = vmatmul.mubr.msk.f32.vlgmr.msra.gmra.mrb[8].mxu0 %vm67_vm0, %v1062_v31 }
 0xb49   :  { %v1604_v39 = vpop.f32.mrb[8].mxu0 }
 0xb4a   :  { %v1161_v34 = vadd.f32 %v1604_v39, %v1066_v33  ;;  %v1155_v35 = vpop.f32.mrb[9].mxu0 }
 0xb4b   :  { %v1156_v36 = vadd.f32 %v1155_v35, %v1066_v33 }
 0xb4c   :  { %v2126_v38 = vadd.f32 %v1161_v34, %v1966_v1 }
 0xb4d   :  { %v2129_v37 = vadd.f32 %v1156_v36, %v1964_v0 }
 0xb4e   :  { %v1169_v42 = vsel %vm67_vm0, %v2126_v38, 0.0 }
 0xb4f   :  { %1170 = vadd.xlane.f32.xlu1 %v1169_v42  ;;  %v1166_v43 = vsel %vm67_vm0, %v2129_v37, 0.0 }
 0xb50   :  { %1167 = vadd.xlane.f32.xlu0 %v1166_v43 }
 0xb60   :  { %1780 = vrot.lane.b32.xlu1 %v1779_v54, %s1911_s11 }
 0xbdc   :  { %v1171_v55 = vpop.xlane.xlu1 %1170 }
 0xbdd   :  { %v1173_v44 = vmul.f32 0.03125, %v1171_v55  ;;  %v1168_v5 = vpop.xlane.xlu0 %1167 }
 0xbde   :  { %v1172_v8 = vmul.f32 0.03125, %v1168_v5 }
 0xbdf   :  { %v1175_v46 = vsub.f32 %v2126_v38, %v1173_v44 }
 0xbe0   :  { %v1174_v1 = vsub.f32 %v2129_v37, %v1172_v8  ;;  %v1781_v13 = vpop.permute.xlu1 %1780 }
 0xbe1   :  { %v1177_v50 = vmul.f32 %v1175_v46, %v1175_v46  ;;  %v1783_v18 = vunpack.i.h.bf16 %v1781_v13  ;;  %v1782_v20 = vunpack.i.l.bf16 %v1781_v13 }
 0xbe2   :  { %v1176_v49 = vmul.f32 %v1174_v1, %v1174_v1 }
 0xbe3   :  { %v1181_v51 = vsel %vm67_vm0, %v1177_v50, 0.0  ;;  %v1697_v21 = vpack.c.bf16 %v1783_v18, %v1782_v20  ;;  %v1309_v50 = vsub.s32 3, %v1990_v27 }
 0xbe4   :  { %v1178_v0 = vsel %vm67_vm0, %v1176_v49, 0.0 }
 0xbe5   :  { %1179 = vadd.xlane.f32.xlu0 %v1178_v0 }
 0xbe9   :  { %1182 = vadd.xlane.f32.xlu0 %v1181_v51  ;;  %v1310_v51 = vrot.slane %v1993_v30, %v1309_v50 }
 0xbff   :  { %1775 = vrot.lane.b32.xlu0 %v1774_v40, %s1911_s11 }
 0xc72   :  { %v1180_v56 = vpop.xlane.xlu0 %1179 }
 0xc73   :  { %v1184_v57 = vmul.f32 0.03125, %v1180_v56 }
 0xc75   :  { %v1186_v58 = vadd.f32 1e-05, %v1184_v57 }
 0xc76   :  { %v1183_v59 = vpop.xlane.xlu0 %1182 }
 0xc77   :  { %1820 = vrsqrt.f32 %v1186_v58  ;;  %v1185_v60 = vmul.f32 0.03125, %v1183_v59 }
 0xc79   :  { %v1187_v61 = vadd.f32 1e-05, %v1185_v60 }
 0xc7a   :  { %v1776_v9 = vpop.permute.xlu0 %1775 }
 0xc7b   :  { %1822 = vrsqrt.f32 %v1187_v61  ;;  %v1778_v10 = vunpack.i.h.bf16 %v1776_v9  ;;  %v1777_v11 = vunpack.i.l.bf16 %v1776_v9 }
 0xc7d   :  { %v1691_v12 = vpack.c.bf16 %v1778_v10, %v1777_v11 }
 0xc7f   :  { %1693 = vmatprep.subr.msk.bf16.mxu0 %vm1692_vm12, %v1691_v12 }
 0xc80   :  { %1696 = vmatpush3.bf16.xpose.msk.msra.mxu0 %vm1692_vm12, %v1691_v12 }
 0xc81   :  { %v1821_v3 = vpop.eup %1820  ;;  %1699 = vmatprep.subr.msk.bf16.mxu0 %vm1692_vm12, %v1697_v21 }
 0xc82   :  { %v1190_v47 = vmul.f32 %v1821_v3, %v1174_v1 }
 0xc84   :  { %v1196_v4 = vmul.f32 %v1195_v2, %v1190_v47 }
 0xc85   :  { %v1823_v14 = vpop.eup %1822 }
 0xc86   :  { %v1191_v15 = vmul.f32 %v1823_v14, %v1175_v46  ;;  %v1202_v17 = vadd.f32 %v1201_v45, %v1196_v4 }
 0xc88   :  { %v1197_v6 = vmul.f32 %v1195_v2, %v1191_v15  ;;  %1613 = vmatprep.mubr.msk.f32.mxu1 %vm67_vm0, %v1202_v17  ;;  %1702 = vmatpush3.bf16.xpose.msk.msra.mxu0 %vm1692_vm12, %v1697_v21 }
 0xc8a   :  { %v1203_v7 = vadd.f32 %v1201_v45, %v1197_v6 }
 0xc8c   :  { %1614 = vmatmul.mubr.msk.f32.vlgmr.msra.gmra.mrb[10].mxu1 %vm67_vm0, %v1203_v7 }
 0xd5f   :  { %v1615_v24 = vpop.f32.mrb[10].mxu1 }
 0xd60   :  { %v1286_v25 = vadd.f32 %v1615_v24, %v1207_v23  ;;  %v1280_v26 = vpop.f32.mrb[11].mxu1 }
 0xd61   :  { %v1281_v28 = vadd.f32 %v1280_v26, %v1207_v23 }
 0xd62   :  { %v1292_v29 = vmul.f32 0.044715, %v1286_v25  ;;  %v1290_v1 = vmul.f32 0.5, %v1286_v25 }
 0xd63   :  { %v1291_v31 = vmul.f32 0.044715, %v1281_v28  ;;  %v1289_v8 = vmul.f32 0.5, %v1281_v28 }
 0xd64   :  { %v1294_v32 = vmul.f32 %v1292_v29, %v1286_v25 }
 0xd65   :  { %v1293_v33 = vmul.f32 %v1291_v31, %v1281_v28 }
 0xd66   :  { %v1296_v39 = vmul.f32 %v1294_v32, %v1286_v25 }
 0xd67   :  { %v1295_v34 = vmul.f32 %v1293_v33, %v1281_v28 }
 0xd68   :  { %v1298_v35 = vadd.f32 %v1296_v39, %v1286_v25 }
 0xd69   :  { %v1297_v36 = vadd.f32 %v1295_v34, %v1281_v28 }
 0xd6a   :  { %v1300_v42 = vmul.f32 0.7978846, %v1298_v35 }
 0xd6b   :  { %v1299_v43 = vmul.f32 0.7978846, %v1297_v36 }
 0xd6c   :  { %1824 = vtanh.f32 %v1300_v42 }
 0xd6d   :  { %1826 = vtanh.f32 %v1299_v43 }
 0xd76   :  { %v1825_v55 = vpop.eup %1824 }
 0xd77   :  { %v1827_v44 = vpop.eup %1826  ;;  %v1304_v5 = vadd.f32 1.0, %v1825_v55 }
 0xd78   :  { %v1303_v46 = vadd.f32 1.0, %v1827_v44 }
 0xd79   :  { %v1306_v0 = vmul.f32 %v1304_v5, %v1290_v1 }
 0xd7a   :  { %v1305_v49 = vmul.f32 %v1303_v46, %v1289_v8 }
 0xd7c   :  { %1624 = vmatprep.mubr.msk.f32.mxu0 %vm1323_vm11, %v1305_v49 }
 0xd7d   :  { %1625 = vmatmul.mubr.msk.f32.vlgmr.msra.gmra.mrb[10].mxu0 %vm1323_vm11, %v1306_v0 }
 0xe50   :  { %v1626_v48 = vpop.f32.mrb[10].mxu0 }
 0xe51   :  { %v1410_v52 = vadd.f32 %v1626_v48, %v1310_v51  ;;  %v1404_v16 = vpop.f32.mrb[11].mxu0 }
 0xe52   :  { %v1405_v19 = vadd.f32 %v1404_v16, %v1310_v51 }
 0xe53   :  { %v1414_v41 = vadd.f32 %v1410_v52, %v2126_v38 }
 0xe54   :  { %v1413_v53 = vadd.f32 %v1405_v19, %v2129_v37 }
 0xe55   :  { %1416 = vst.msk [vmem:[#allocation7 + $0x8] sm:$0xff] %vm67_vm0, %v1414_v41 }
 0xe56   :  { %1415 = vst.msk [vmem:[#allocation7] sm:$0xff] %vm67_vm0, %v1413_v53 }
 0xe57   :  { %1883 = shalt.err (!%p1880_p6)
}
 0xe58   :  { %s1884_s27 = scalar_lea.hbm %s2176_s2, 256 }
 0xe59   :  { %p1885_p7 = scmp.ne.s32.totalorder %s2176_s2, %s1884_s27  ;;  %p1888_p8 = scmp.lt.u32.totalorder %s1884_s27, %s2176_s2 }
 0xe5b   :  { %p1890_p9 = pnand %p1888_p8, %p1885_p7 }
 0xe5d   :  { %1893 = shalt.err (!%p1890_p9)
}
 0xe5e   :  { %1428 = dma.vmem_to_hbm [thread:$0]  %s1423_s23, 256, %s2176_s2, [#allocation4], %s1901_s19, %s1901_s19, %s1902_s20  }
 0xe5f   :  { %1898 = dma.done.wait [#allocation4], 256  }
 0xe60   :  { %1899 = vsyncadd [#allocation4], 4294967040 }
 0xe61   :  { %1432 = vsyncpa [#allocation3], 1 }
 0xe62   :  { %1433 = vsyncpa [#allocation6], 1 }
 0xe63   :  { %1434 = vsyncpa [#allocation4], 1 }

</bundles_post_ra>
